<compile_context>
chip_gen: v7x
topology: tpu7x:2x2x1
jax: 0.10.0
libtpu: 0.0.40
codegen_flags: <defaults>
</compile_context>

<pallas_src>
import math
from functools import partial

import jax
import jax.numpy as jnp
from jax.experimental import pallas as pl
from jax.experimental.pallas import tpu as pltpu

RATE = 0.3

_LANE = 128
_TARGET_TILE_BYTES = 2 << 20  # ~2 MiB lane-dense tile per grid step


def _cdiv(a, b):
    return (a + b - 1) // b


def _noscale_dropout_kernel(keep_ref, x_ref, o_ref):
    # keep_ref: (B,) int32 in SMEM (scalar prefetch); 0 = drop, 1 = keep.
    # x_ref / o_ref: one (1, TR, 128) lane-dense tile of one sample in VMEM.
    b = pl.program_id(0)
    k = keep_ref[b].astype(o_ref.dtype)
    o_ref[...] = x_ref[...] * k  # NO rescaling (NoScaleDropout semantics)


@partial(jax.jit, static_argnums=(1,))
def _noscale_dropout_impl(x, rate, key):
    orig_shape = x.shape
    B = x.shape[0]
    N = math.prod(x.shape[1:])
    itemsize = jnp.dtype(x.dtype).itemsize

    # Per-sample Bernoulli(1 - rate) keep mask as int32 scalars for SMEM.
    # TODO(synk): torch's bernoulli_ RNG stream is not bit-reproduced (jax.random used).
    keep = jax.random.bernoulli(key, p=1.0 - rate, shape=(B,)).astype(jnp.int32)

    # dtype-aware sublane packing: 8 rows (f32), 16 (bf16/f16), 32 (int8/fp8).
    sublane = max(8, 32 // itemsize)

    # Lane-dense (B, rows, 128) view.  Pad only up to the next multiple of 128;
    # the ragged final row-tile is handled by Pallas' masked partial block.
    rows = _cdiv(N, _LANE)
    lane_pad = rows * _LANE - N

    target_rows = max(
        sublane, (_TARGET_TILE_BYTES // (_LANE * itemsize)) // sublane * sublane
    )
    tr = int(min(target_rows, _cdiv(rows, sublane) * sublane))
    n_tiles = _cdiv(rows, tr)

    xf = x.reshape(B, N)
    if lane_pad:
        xf = jnp.pad(xf, ((0, 0), (0, lane_pad)))
    xf = xf.reshape(B, rows, _LANE)

    blk = (1, tr, _LANE)

    # Output tiles walk the sample normally.
    def out_idx(b, j, keep_ref):
        return (b, j, 0)

    # Input tiles: for dropped samples (keep == 0) every step maps to block 0,
    # so the pipeline fetches that sample's input only once (skips HBM reads).
    def in_idx(b, j, keep_ref):
        return (b, j * keep_ref[b], 0)

    out = pl.pallas_call(
        _noscale_dropout_kernel,
        out_shape=jax.ShapeDtypeStruct((B, rows, _LANE), x.dtype),
        grid_spec=pltpu.PrefetchScalarGridSpec(
            num_scalar_prefetch=1,
            grid=(B, n_tiles),
            in_specs=[pl.BlockSpec(blk, in_idx)],
            out_specs=pl.BlockSpec(blk, out_idx),
        ),
        compiler_params=pltpu.CompilerParams(
            dimension_semantics=("parallel", "parallel"),
        ),
        # Reuse the fresh padded staging buffer as the output allocation.
        # Only applied when xf is genuinely a new buffer (padded path).
        input_output_aliases=({1: 0} if lane_pad else {}),
    )(keep, xf)

    if lane_pad:
        return out.reshape(B, rows * _LANE)[:, :N].reshape(orig_shape)
    return out.reshape(orig_shape)  # free: no byte padding was introduced


def noscale_dropout(x, rate, key, training=True):
    """Pallas implementation of NoScaleDropout.forward (no rescaling)."""
    if (not training) or rate == 0.0:
        return x
    return _noscale_dropout_impl(x, float(rate), key)


if __name__ == "__main__":
    key = jax.random.PRNGKey(0)
    data_key, mask_key, data_key2, mask_key2 = jax.random.split(key, 4)

    # --- lane-aligned fast path: C*H*W % 128 == 0 (no pad, no final slice) ---
    B, C, H, W = 2, 4, 16, 16
    x = jax.random.normal(data_key, (B, C, H, W), dtype=jnp.float32)
    out = jax.block_until_ready(noscale_dropout(x, RATE, mask_key, training=True))

    ref_keep = jax.random.bernoulli(mask_key, p=1.0 - RATE, shape=(B,))
    ref = x * ref_keep.astype(x.dtype)[:, None, None, None]
    assert bool(jnp.allclose(out, ref)), "fast path: kernel != reference"
    for b in range(B):
        kept = bool(jnp.allclose(out[b], x[b]))
        dropped = bool(jnp.all(out[b] == 0.0))
        assert kept or dropped, f"sample {b}: mask must be 0 or 1 per sample"

    # --- unaligned general path: lane padding + ragged (masked) row tile ---
    B2 = 3
    x2 = jax.random.normal(data_key2, (B2, 3, 10, 10), dtype=jnp.float32)
    out2 = jax.block_until_ready(noscale_dropout(x2, RATE, mask_key2, training=True))
    ref_keep2 = jax.random.bernoulli(mask_key2, p=1.0 - RATE, shape=(B2,))
    ref2 = x2 * ref_keep2.astype(x2.dtype)[:, None, None, None]
    assert bool(jnp.allclose(out2, ref2)), "general path: kernel != reference"

    # --- eval mode / rate == 0: identity ---
    out_eval = noscale_dropout(x, RATE, mask_key, training=False)
    assert bool(jnp.allclose(out_eval, x))
    out_zero = noscale_dropout(x, 0.0, mask_key, training=True)
    assert bool(jnp.allclose(out_zero, x))

    print("KERNEL_OK")
</pallas_src>

<mosaic_0001>
module attributes {stable_mosaic.version = 11 : i64} {
  func.func @_noscale_dropout_kernel(%arg0: i32, %arg1: i32, %arg2: memref<2xi32, #tpu.memory_space<smem>>, %arg3: memref<1x8x128xf32, #tpu.memory_space<vmem>>, %arg4: memref<1x8x128xf32, #tpu.memory_space<vmem>>) attributes {dimension_semantics = [#tpu.dimension_semantics<parallel>, #tpu.dimension_semantics<parallel>], iteration_bounds = array<i64: 2, 1>, scalar_prefetch = 1 : i64, scratch_operands = 0 : i64, tpu.core_type = #tpu.core_type<tc>, window_params = [{transform_indices = @transform_0, window_bounds = array<i64: 1, 8, 128>}, {transform_indices = @transform_1, window_bounds = array<i64: 1, 8, 128>}]} {
    %0 = arith.index_cast %arg0 : i32 to index
    %1 = memref.load %arg2[%0] : memref<2xi32, #tpu.memory_space<smem>>
    %2 = arith.sitofp %1 : i32 to f32
    %c0 = arith.constant 0 : index
    %c0_0 = arith.constant 0 : index
    %c0_1 = arith.constant 0 : index
    %3 = vector.load %arg3[%c0, %c0_0, %c0_1] : memref<1x8x128xf32, #tpu.memory_space<vmem>>, vector<1x8x128xf32>
    %4 = vector.broadcast %2 : f32 to vector<1x8x128xf32>
    %5 = arith.mulf %3, %4 : vector<1x8x128xf32>
    %c0_2 = arith.constant 0 : index
    %c0_3 = arith.constant 0 : index
    %c0_4 = arith.constant 0 : index
    %6 = vector.load %arg4[%c0_2, %c0_3, %c0_4] : memref<1x8x128xf32, #tpu.memory_space<vmem>>, vector<1x8x128xf32>
    tpu.vector_store %arg4[%c0_2, %c0_3, %c0_4], %5 {strides = array<i32>} : memref<1x8x128xf32, #tpu.memory_space<vmem>>, vector<1x8x128xf32>,
    return
  }
  func.func @transform_0(%arg0: i32, %arg1: i32, %arg2: memref<2xi32, #tpu.memory_space<smem>>) -> (i32, i32, i32) {
    %0 = arith.index_cast %arg0 : i32 to index
    %1 = memref.load %arg2[%0] : memref<2xi32, #tpu.memory_space<smem>>
    %2 = arith.muli %arg1, %1 : i32
    %c0_i32 = arith.constant 0 : i32
    %c0_i32_0 = arith.constant 0 : i32
    return %arg0, %2, %c0_i32 : i32, i32, i32
  }
  func.func @transform_1(%arg0: i32, %arg1: i32, %arg2: memref<2xi32, #tpu.memory_space<smem>>) -> (i32, i32, i32) {
    %c0_i32 = arith.constant 0 : i32
    %c0_i32_0 = arith.constant 0 : i32
    return %arg0, %arg1, %c0_i32 : i32, i32, i32
  }
}

</mosaic_0001>

<bundles_post_ra>
// kernel: _noscale_dropout_impl.1
= control target key start
LH: loop header
LB: loop body
LE: loop exit
PB: predicated region body
PF: predicated region fallthrough
CT: control target
= control target key end

     0   :  { %s356_s0 = inlined_call_operand.vmem [shape: s32[2], index: 0, kind: input, shape index: {}]   ;;  %s357_s1 = inlined_call_operand.vmem [shape: f32[2,8,128], index: 1, kind: input, shape index: {}]   ;;  %s358_s2 = inlined_call_operand.vmem [shape: f32[2,8,128], index: 2, kind: output, shape index: {}]  }
   0x1   :  { %s7_s11 = sshll.u32 %s356_s0, 4  ;;  %s8_s11 = int_to_ptr.vmem [resolvable:$true] %s7_s11 }
   0x2   :  { %s278_s12 = scalar_lea.vmem %s8_s11, 16  ;;  %p283_p1 = scmp.lt.s32.totalorder %s8_s11, %s8_s11 }
   0x3   :  { %p279_p0 = scmp.ne.s32.totalorder %s8_s11, %s278_s12  ;;  %p284_p2 = scmp.lt.s32.totalorder %s278_s12, %s278_s12 }
   0x5   :  { %p285_p3 = por %p284_p2, %p283_p1 }
   0x7   :  { %p286_p4 = pnand %p285_p3, %p279_p0 }
   0x9   :  { %289 = shalt.err (!%p286_p4)  }
   0xa   :  { %s316_s13 = smov [#allocation3]  }
   0xb   :  { %10 = dma.vmem_to_smem %s8_s11, 16, %s316_s13, [#allocation2] }
   0xc   :  { %302 = dma.done.wait [#allocation2], 16 }
   0xd   :  { %303 = vsyncadd [#allocation2], 4294967280 }
   0xe   :  { %12 = sfence }
   0xf   :  { %s335_s14 = smov 0   ;;  %s337_s15 = smov 0  }
  0x10   :  { %s339_s16 = smov 0  }
  0x11 LB: > { %s30_s0 = sadd.s32 1, %s310_s15  ;;  %p248_p5 = scmp.ge.s32.totalorder %s314_s16, 1  ;;  %s314_s16 = sphi %s339_s16, %s18_s16   ;;  %s310_s15 = sphi %s337_s15, %s360_s15   ;;  %s306_s14 = sphi %s335_s14, %s359_s14  }
  0x12   : > { %p32_p6 = scmp.ge.s32.totalorder %s30_s0, 2  ;;  %p120_p7 = scmp.lt.s32.totalorder %s314_s16, 3 }
  0x14   : > { %s362_s0 = smov (%p32_p6, %s30_s0), 0  ;;  %p121_p8 = pnand %p248_p5, %p120_p7 }
  0x15   : > { %p148_p9 = scmp.lt.s32.totalorder (!%p121_p8), %s306_s14, 1  ;;  %s164_s17 = sld [smem:[#allocation3 + %s306_s14]] (!%p121_p8) }
  0x16   : > { %124 = sbr.rel (%p121_p8) target bundleno = 36 (0x24), region = 24 }
  0x1b   : > { %s165_s22 = scvt.s32.f32 (!%p121_p8), %s164_s17 }
  0x1d   : > { %s364_s14 = smov (!%p148_p9, %s306_s14), 1  ;;  %v167_v1 = vstv %s165_s22 }
  0x1e   : > { %s249_s18 = sshll.u32 %s364_s14, 3 }
  0x1f   : > { %s154_s21 = scalar_lea.vmem %s357_s1, %s249_s18  ;;  %s163_s25 = scalar_lea.vmem %s358_s2, %s249_s18 }
  0x20   : > { %v166_v0 = vld [vmem:[%s154_s21] sm:$0xff] }
  0x21   : > { %v168_v2 = vmul.f32 %v167_v1, %v166_v0 }
  0x23   : > { %169 = vst [vmem:[%s163_s25] sm:$0xff] %v168_v2 }
  0x24 PF: > { %s18_s16 = sadd.s32 1, %s314_s16   ;;  %s359_s14 = smov %s310_s15 }
  0x25   : > { %p15_p10 = scmp.ge.s32.totalorder %s18_s16, 4   ;;  %s360_s15 = smov %s362_s0 }
  0x27   :  { %17 = sbr.rel (!%p15_p10) target bundleno = 17 (0x11), region = 54 }

</bundles_post_ra>
